<compile_context>
chip_gen: v5e
topology: v5e:2x2
jax: 0.10.0
libtpu: 0.0.40
codegen_flags: <defaults>
</compile_context>

<pallas_src>
import jax
import jax.numpy as jnp
from jax.experimental import pallas as pl
from jax.experimental.pallas import tpu as pltpu


def _round_up(x, m):
    return ((x + m - 1) // m) * m


def _lora_kernel(w_ref, x_ref, a_ref, b_ref, o_ref, xa_ref):
    # w_ref: SMEM scalar (1,) f32; x/a/b/o: VMEM tiles; xa_ref: f32 VMEM scratch.
    # The x block only changes with the row index i (j is the inner grid axis),
    # so compute the scaled intermediate once per row tile and reuse it for
    # every out_dim tile j.
    @pl.when(pl.program_id(1) == 0)
    def _():
        xa = jnp.dot(x_ref[...], a_ref[...], preferred_element_type=jnp.float32)
        xa_ref[...] = xa * w_ref[0]

    # Second MXU matmul in B's dtype (bf16-friendly when B is bf16), f32 accum.
    y = jnp.dot(xa_ref[...].astype(b_ref.dtype), b_ref[...],
                preferred_element_type=jnp.float32)
    o_ref[...] = y.astype(o_ref.dtype)


def _vmem_budget_bytes():
    # Per-generation VMEM: v5e/v6e 128 MiB, v7x 64 MiB per TensorCore.
    try:
        cap = pltpu.get_tpu_info().vmem_capacity_bytes
    except Exception:
        cap = 64 * 1024 * 1024          # conservative default, safe everywhere
    vmem_limit = int(cap * 3 // 4)      # scoped limit, leave compiler headroom
    tile_budget = int(cap * 2 // 5)     # what the tile-size heuristic may use
    return tile_budget, vmem_limit


def _choose_tiles(M, in_dim, rank_p, out_dim, x_size, p_size, budget):
    m_cap = _round_up(max(M, 1), 8)

    def tm_for(tn):
        # Footprint per row tile: double-buffered x and out tiles + A + B tile
        # + f32 xa scratch + f32 pre-cast output temp.
        fixed = (in_dim * rank_p + rank_p * tn) * p_size * 2
        per_row = (in_dim + tn) * x_size * 2 + (rank_p + tn) * 4
        avail = budget - fixed
        if avail <= 0:
            return 0
        return (avail // per_row // 8) * 8

    target_tm = min(256, m_cap)

    # Prefer collapsing the out_dim axis entirely (effectively a 1-D grid over
    # row tiles) whenever a decent row tile still fits the VMEM budget;
    # mandatory when out_dim is not a multiple of 128 (full-extent block).
    if out_dim % 128 != 0 or tm_for(out_dim) >= target_tm:
        tn = out_dim
    else:
        tn = 128
        for cand in (1024, 512, 256):
            if out_dim % cand == 0 and tm_for(cand) >= target_tm:
                tn = cand
                break

    tm = max(8, min(1024, tm_for(tn), m_cap))
    # Keep >= 2 row programs when M allows it: needed for megacore sharding on
    # v7x's two TensorCores, near-free (~0.35 us/step) on v5e/v6e.
    if M >= 16:
        tm = min(tm, max(8, _round_up((M + 1) // 2, 8)))
    return tm, tn


def lora_forward(x, A, B, weight=1.0):
    """y = weight * (x @ A @ B), computed in a Pallas TPU kernel.

    x: [..., in_dim]; A: [in_dim, rank]; B: [rank, out_dim]
    Returns [..., out_dim] with x's dtype.
    """
    in_dim, rank = A.shape
    rank_b, out_dim = B.shape
    assert rank == rank_b and x.shape[-1] == in_dim

    lead = x.shape[:-1]
    x2d = x.reshape(-1, in_dim)
    M = x2d.shape[0]

    # A/B are tiny: cast them to x's dtype so both matmuls stay on one MXU
    # path (important on v5e's bf16 MXU when x is bf16).
    A = A.astype(x.dtype)
    B = B.astype(x.dtype)

    x_size = jnp.dtype(x.dtype).itemsize
    p_size = x_size

    # Zero-pad rank to a sublane-friendly multiple; padded A columns / B rows
    # are zeros so results are unchanged, and the MXU pass count is identical.
    rank_mult = 8 if p_size >= 4 else 16
    rank_pad = _round_up(rank, rank_mult)
    if rank_pad != rank:
        A = jnp.pad(A, ((0, 0), (0, rank_pad - rank)))
        B = jnp.pad(B, ((0, rank_pad - rank), (0, 0)))

    tile_budget, vmem_limit = _vmem_budget_bytes()
    tm, tn = _choose_tiles(M, in_dim, rank_pad, out_dim, x_size, p_size,
                           tile_budget)

    # Ragged last row block is handled by Pallas: OOB input reads are garbage
    # but the corresponding output stores are masked (no reduction over M).
    grid = (pl.cdiv(M, tm), pl.cdiv(out_dim, tn))

    # Weight as an SMEM-prefetched scalar: works with traced values and avoids
    # recompiling the kernel for every new weight value.
    w_arr = jnp.asarray(weight, dtype=jnp.float32).reshape((1,))

    cost = pl.CostEstimate(
        flops=2 * M * rank_pad * (in_dim + out_dim),
        transcendentals=0,
        bytes_accessed=(M * in_dim + M * out_dim) * x_size
                       + (in_dim * rank_pad + rank_pad * out_dim) * p_size,
    )

    out2d = pl.pallas_call(
        _lora_kernel,
        out_shape=jax.ShapeDtypeStruct((M, out_dim), x.dtype),
        grid_spec=pltpu.PrefetchScalarGridSpec(
            num_scalar_prefetch=1,
            grid=grid,
            in_specs=[
                pl.BlockSpec((tm, in_dim), lambda i, j, w: (i, 0)),        # x rows
                pl.BlockSpec((in_dim, rank_pad), lambda i, j, w: (0, 0)),  # A full
                pl.BlockSpec((rank_pad, tn), lambda i, j, w: (0, j)),      # B cols
            ],
            out_specs=pl.BlockSpec((tm, tn), lambda i, j, w: (i, j)),
            scratch_shapes=[pltpu.VMEM((tm, rank_pad), jnp.float32)],      # xa cache
        ),
        compiler_params=pltpu.CompilerParams(
            # j carries the xa scratch across iterations -> must be arbitrary;
            # i stays parallel for megacore sharding.
            dimension_semantics=("parallel", "arbitrary"),
            vmem_limit_bytes=vmem_limit,
        ),
        cost_estimate=cost,
    )(w_arr, x2d, A, B)

    return out2d.reshape(*lead, out_dim)


if __name__ == "__main__":
    # module config (small, consistent with LoRA(in_dim, out_dim, rank=2))
    in_dim, out_dim, rank, weight = 32, 32, 2, 1.0
    batch = 8

    key = jax.random.PRNGKey(0)
    kx, ka, kb = jax.random.split(key, 3)

    # deterministic parameter init, matching the module's __init__:
    #   A = randn(in_dim, rank) * 1/sqrt(rank);  B = zeros(rank, out_dim)
    std_dev = 1.0 / jnp.sqrt(jnp.float32(rank))
    A = jax.random.normal(ka, (in_dim, rank), dtype=jnp.float32) * std_dev
    B = jnp.zeros((rank, out_dim), dtype=jnp.float32)

    x = jax.random.normal(kx, (batch, in_dim), dtype=jnp.float32)

    # run the kernel with the module-faithful params (B == 0 -> output zeros)
    y = jax.block_until_ready(lora_forward(x, A, B, weight))
    y_ref = weight * (x @ A @ B)
    assert jnp.allclose(y, y_ref, atol=1e-5, rtol=1e-5)

    # extra sanity check with a nonzero B so the matmul path is really tested
    B_rand = jax.random.normal(kb, (rank, out_dim), dtype=jnp.float32)
    y2 = jax.block_until_ready(lora_forward(x, A, B_rand, 0.5))
    y2_ref = 0.5 * (x @ A @ B_rand)
    assert jnp.allclose(y2, y2_ref, atol=1e-4, rtol=1e-4)

    # ragged M path (no wrapper pad/slice; masked last-block stores) with a
    # leading-dim reshape and a multi-program row grid
    x3 = jax.random.normal(kx, (3, 7, in_dim), dtype=jnp.float32)
    y3 = jax.block_until_ready(lora_forward(x3, A, B_rand, 2.0))
    y3_ref = 2.0 * (x3 @ A @ B_rand)
    assert jnp.allclose(y3, y3_ref, atol=1e-4, rtol=1e-4)

    print("KERNEL_OK")
</pallas_src>

<mosaic_0001>
module attributes {stable_mosaic.version = 11 : i64} {
  func.func @_lora_kernel(%arg0: i32, %arg1: i32, %arg2: memref<1xf32, #tpu.memory_space<smem>>, %arg3: memref<8x32xf32, #tpu.memory_space<vmem>>, %arg4: memref<32x8xf32, #tpu.memory_space<vmem>>, %arg5: memref<8x32xf32, #tpu.memory_space<vmem>>, %arg6: memref<8x32xf32, #tpu.memory_space<vmem>>, %arg7: memref<8x8xf32, #tpu.memory_space<vmem>>) attributes {dimension_semantics = [#tpu.dimension_semantics<parallel>, #tpu.dimension_semantics<arbitrary>], iteration_bounds = array<i64: 1, 1>, scalar_prefetch = 1 : i64, scratch_operands = 1 : i64, tpu.core_type = #tpu.core_type<tc>, window_params = [{transform_indices = @transform_0, window_bounds = array<i64: 8, 32>}, {pipeline_mode = #tpu.pipeline_mode<synchronous>, transform_indices = @transform_1, window_bounds = array<i64: 32, 8>}, {transform_indices = @transform_2, window_bounds = array<i64: 8, 32>}, {transform_indices = @transform_3, window_bounds = array<i64: 8, 32>}]} {
    %c0_i32 = arith.constant 0 : i32
    %0 = arith.cmpi eq, %arg1, %c0_i32 : i32
    %1 = arith.extui %0 : i1 to i32
    %c0_i32_0 = arith.constant 0 : i32
    %2 = arith.cmpi ne, %1, %c0_i32_0 : i32
    scf.if %2 {
      %c0_6 = arith.constant 0 : index
      %c0_7 = arith.constant 0 : index
      %7 = vector.load %arg3[%c0_6, %c0_7] : memref<8x32xf32, #tpu.memory_space<vmem>>, vector<8x32xf32>
      %c0_8 = arith.constant 0 : index
      %c0_9 = arith.constant 0 : index
      %8 = vector.load %arg4[%c0_8, %c0_9] : memref<32x8xf32, #tpu.memory_space<vmem>>, vector<32x8xf32>
      %cst_10 = arith.constant dense<0.000000e+00> : vector<8x8xf32>
      %9 = tpu.matmul %7, %8, %cst_10 {dimension_numbers = #tpu.dot_dimension_numbers<[1], [0], [0], [1], [0, 0, 1, 1], [], []>} : vector<8x32xf32>, vector<32x8xf32>, vector<8x8xf32> -> vector<8x8xf32>
      %c0_11 = arith.constant 0 : index
      %10 = memref.load %arg2[%c0_11] : memref<1xf32, #tpu.memory_space<smem>>
      %11 = vector.broadcast %10 : f32 to vector<8x8xf32>
      %12 = arith.mulf %9, %11 : vector<8x8xf32>
      %c0_12 = arith.constant 0 : index
      %c0_13 = arith.constant 0 : index
      %13 = vector.load %arg7[%c0_12, %c0_13] : memref<8x8xf32, #tpu.memory_space<vmem>>, vector<8x8xf32>
      tpu.vector_store %arg7[%c0_12, %c0_13], %12 {strides = array<i32>} : memref<8x8xf32, #tpu.memory_space<vmem>>, vector<8x8xf32>,
    } else {
    }
    %c0 = arith.constant 0 : index
    %c0_1 = arith.constant 0 : index
    %3 = vector.load %arg7[%c0, %c0_1] : memref<8x8xf32, #tpu.memory_space<vmem>>, vector<8x8xf32>
    %c0_2 = arith.constant 0 : index
    %c0_3 = arith.constant 0 : index
    %4 = vector.load %arg5[%c0_2, %c0_3] : memref<8x32xf32, #tpu.memory_space<vmem>>, vector<8x32xf32>
    %cst = arith.constant dense<0.000000e+00> : vector<8x32xf32>
    %5 = tpu.matmul %3, %4, %cst {dimension_numbers = #tpu.dot_dimension_numbers<[1], [0], [0], [1], [0, 0, 1, 1], [], []>} : vector<8x8xf32>, vector<8x32xf32>, vector<8x32xf32> -> vector<8x32xf32>
    %c0_4 = arith.constant 0 : index
    %c0_5 = arith.constant 0 : index
    %6 = vector.load %arg6[%c0_4, %c0_5] : memref<8x32xf32, #tpu.memory_space<vmem>>, vector<8x32xf32>
    tpu.vector_store %arg6[%c0_4, %c0_5], %5 {strides = array<i32>} : memref<8x32xf32, #tpu.memory_space<vmem>>, vector<8x32xf32>,
    return
  }
  func.func @transform_0(%arg0: i32, %arg1: i32, %arg2: memref<1xf32, #tpu.memory_space<smem>>) -> (i32, i32) {
    %c0_i32 = arith.constant 0 : i32
    %c0_i32_0 = arith.constant 0 : i32
    return %arg0, %c0_i32 : i32, i32
  }
  func.func @transform_1(%arg0: i32, %arg1: i32, %arg2: memref<1xf32, #tpu.memory_space<smem>>) -> (i32, i32) {
    %c0_i32 = arith.constant 0 : i32
    %c0_i32_0 = arith.constant 0 : i32
    %c0_i32_1 = arith.constant 0 : i32
    return %c0_i32, %c0_i32_0 : i32, i32
  }
  func.func @transform_2(%arg0: i32, %arg1: i32, %arg2: memref<1xf32, #tpu.memory_space<smem>>) -> (i32, i32) {
    %c0_i32 = arith.constant 0 : i32
    %c0_i32_0 = arith.constant 0 : i32
    return %c0_i32, %arg1 : i32, i32
  }
  func.func @transform_3(%arg0: i32, %arg1: i32, %arg2: memref<1xf32, #tpu.memory_space<smem>>) -> (i32, i32) {
    %c0_i32 = arith.constant 0 : i32
    return %arg0, %arg1 : i32, i32
  }
}

</mosaic_0001>

<bundles_post_ra>
// kernel: tpu_custom_call.1
= control target key start
LH: loop header
LB: loop body
LE: loop exit
PB: predicated region body
PF: predicated region fallthrough
CT: control target
= control target key end

     0   :  { %s180_s0 = inlined_call_operand.<no memory space> [shape: f32[1], index: 0, kind: input, shape index: {}]   ;;  %s181_s1 = inlined_call_operand.vmem [shape: f32[8,32], index: 1, kind: input, shape index: {}]   ;;  %s182_s2 = inlined_call_operand.vmem [shape: f32[32,8], index: 2, kind: input, shape index: {}]   ;;  %s183_s3 = inlined_call_operand.vmem [shape: f32[8,32], index: 3, kind: input, shape index: {}]   ;;  %s184_s4 = inlined_call_operand.hbm [shape: f32[8,32], index: 4, kind: output, shape index: {}]  }
   0x1   :  { %v25_v0 = vld [vmem:[%s182_s2 + $0x18] sm:$0xff]  ;;  %v24_v1 = vld [vmem:[%s182_s2 + $0x10] sm:$0xff] }
   0x2   :  { %42 = vmatpush.msra.mxu0 %v25_v0 }
   0x3   :  { %10 = vsyncpa [#allocation6], 0  ;;  %v23_v2 = vld [vmem:[%s182_s2 + $0x8] sm:$0xff]  ;;  %v22_v3 = vld [vmem:[%s182_s2] sm:$0xff]  ;;  %vm26_vm0 = vcmask 261120   ;;  %v51_v6 = vstv %s180_s0  ;;  %vm53_vm1 = vcmask 64512  }
   0x4   :  { %43 = vmatpush.msra.mxu0 %v24_v1  ;;  %v21_v4 = vld [vmem:[%s181_s1] sm:$0xff]  ;;  %s128_s1 = smov [#allocation5]   ;;  %s90_s5 = sshll.u32 %s184_s4, 4  ;;  %s91_s5 = int_to_ptr.hbm [resolvable:$true] %s90_s5 }
   0x5   :  { %v56_v5 = vld [vmem:[%s183_s3] sm:$0xff]  ;;  %s88_s2 = sshll.u32 %s128_s1, 4  ;;  %s89_s2 = int_to_ptr.vmem [resolvable:$true] %s88_s2 }
   0x6   :  { %44 = vmatpush.msra.mxu0 %v23_v2  ;;  %76 = vmatpush.msra.mxu1 %v56_v5 }
   0x8   :  { %45 = vmatpush.msra.mxu0 %v22_v3 }
   0x9   :  { %99 = vmatmul.msk.f32.vlgmr.msra.gmra.mxu0 %vm26_vm0, %v21_v4 }
  0x86   :  { %v47_v7 = vpop.f32.mrf.mxu0 }
  0x87   :  { %v52_v8 = vmul.f32 %v51_v6, %v47_v7 }
  0x89   :  { %54 = vst.msk [vmem:[#allocation2] sm:$0xff] %vm53_vm1, %v52_v8 }
  0x90   :  { %v55_v9 = vld [vmem:[#allocation2] sm:$0xff] }
  0x91   :  { %100 = vmatmul.msk.f32.vlgmr.msra.gmra.mxu1 %vm53_vm1, %v55_v9 }
 0x10e   :  { %v78_v10 = vpop.f32.mrf.mxu1 }
 0x10f   :  { %82 = vst.msk [vmem:[#allocation5] sm:$0xff] %vm26_vm0, %v78_v10 }
 0x110   :  { %93 = dma.vmem_to_hbm [thread:$0]  %s89_s2, 128, %s91_s5, [#allocation6]  }
 0x111   :  { %126 = dma.done.wait [#allocation6], 128  }
 0x112   :  { %127 = vsyncadd [#allocation6], 4294967168 }
 0x113   :  { %98 = vsyncpa [#allocation6], 1 }

</bundles_post_ra>
